<compile_context>
chip_gen: v5e
topology: v5e:2x2
jax: 0.10.0
libtpu: 0.0.40
codegen_flags: <defaults>
</compile_context>

<pallas_src>
import math
import functools

import jax
import jax.numpy as jnp
from jax.experimental import pallas as pl
from jax.experimental.pallas import tpu as pltpu

PRELU_SLOPE = 0.25  # nn.PReLU(1) default init; single shared slope parameter.


def _prelu(x, a=PRELU_SLOPE):
    return jnp.where(x >= 0, x, a * x)


def _batch_tile(batch, row_bytes, budget_bytes=4 << 20, cap=256):
    """Pick a batch tile TB (and padded batch) so one x-block stays under ~4 MiB.

    Keeps double-buffered blocks well inside the default scoped-VMEM limit on
    every TPU generation (v7x has only 64 MiB physical VMEM per TensorCore).
    TB is a multiple of 8 whenever TB < B so 2-D blocks obey the (8, 128) rule.
    """
    tb = max(1, min(batch, cap, budget_bytes // max(row_bytes, 1)))
    if tb >= batch:
        return batch, batch
    tb = max(8, (tb // 8) * 8)
    if tb >= batch:
        return batch, batch
    padded = ((batch + tb - 1) // tb) * tb
    return tb, padded


# -----------------------------------------------------------------------------
# weighted_sum / bilinear_attention kernel  (batch-tiled)
# -----------------------------------------------------------------------------
def _weighted_sum_kernel(x_ref, pad_ref, tgt_ref,
                         wq_ref, wk_ref, wv_ref, wkb_ref,
                         wffn_ref, bffn_ref,
                         out_ref, attn_ref,
                         *, num_heads, head_dim):
    tb, L, dm = x_ref.shape
    A = num_heads * head_dim

    # One big projection matmul per grid step: (TB*L, Dm) @ (Dm, A).
    xf = x_ref[...].reshape(tb * L, dm)
    K = _prelu(jnp.dot(xf, wk_ref[...], preferred_element_type=jnp.float32))      # (TB*L, A)
    V = _prelu(jnp.dot(xf, wv_ref[...], preferred_element_type=jnp.float32))      # (TB*L, A)
    Q = _prelu(jnp.dot(tgt_ref[...], wq_ref[...], preferred_element_type=jnp.float32))  # (TB, A)

    # Bilinear score, reordered:  s = K_h . (q_h @ W_kernel^T) / scale.
    # wkb already holds blockdiag(W_kernel^T) / scale, so R costs A*A per row.
    R = jnp.dot(Q, wkb_ref[...], preferred_element_type=jnp.float32)              # (TB, A)

    K3 = K.reshape(tb, L, A)
    V3 = V.reshape(tb, L, A)

    prod = K3 * R[:, None, :]                                                     # (TB, L, A)
    if num_heads == 1:
        s = jnp.sum(prod, axis=-1)[:, None, :]                                    # (TB, 1, L)
    else:
        s = jnp.swapaxes(
            prod.reshape(tb, L, num_heads, head_dim).sum(axis=-1), 1, 2)          # (TB, H, L)

    # masked_fill(padding, -1e9) + softmax over the sequence (lane axis).
    pad = pad_ref[...]                                                            # (TB, 1, L)
    s = jnp.where(pad >= 0.5, -1e9, s)                                            # (TB, H, L)

    m = jnp.max(s, axis=-1, keepdims=True)
    e = jnp.exp(s - m)
    attn = e * pl.reciprocal(jnp.sum(e, axis=-1, keepdims=True), approx=True)     # (TB, H, L)
    attn_ref[...] = attn

    # Weighted sum of V over the sequence.
    if num_heads == 1:
        o = jnp.einsum("bql,bld->bqd", attn, V3,
                       preferred_element_type=jnp.float32).reshape(tb, A)         # (TB, A)
    else:
        a_exp = jnp.broadcast_to(jnp.swapaxes(attn, 1, 2)[:, :, :, None],
                                 (tb, L, num_heads, head_dim)).reshape(tb, L, A)
        o_cat = jnp.sum(V3 * a_exp, axis=1)                                       # (TB, A) head-concat
        # torch layout: output.transpose(1, 2).view(B, H*d)  (head index fastest)
        o = jnp.swapaxes(o_cat.reshape(tb, num_heads, head_dim), 1, 2).reshape(tb, A)

    # ffn = Linear(attn_dim, seq_model_dim) + PReLU
    y = jnp.dot(o, wffn_ref[...], preferred_element_type=jnp.float32) + bffn_ref[...]
    out_ref[...] = _prelu(y)


def weighted_sum_pooling(transformer_out, mask, target_item_emb, params,
                         *, num_heads=1, use_scale=True):
    B, L, Dm = transformer_out.shape
    Di = target_item_emb.shape[-1]
    A = params["W_q"].shape[1]
    head_dim = A // num_heads
    scale = math.sqrt(A) if use_scale else 1.0

    x = transformer_out.astype(jnp.float32)
    pad3 = mask.astype(jnp.float32).reshape(B, 1, L)            # lane-dense padding mask
    tgt = target_item_emb.astype(jnp.float32)
    # Fold 1/scale and the bilinear-kernel transpose into one block-diagonal matrix:
    # R = Q @ blockdiag(W_kernel^T)/scale  =>  s = K @ W_kernel @ Q^T / scale.
    wkb = jnp.kron(jnp.eye(num_heads, dtype=jnp.float32),
                   params["W_kernel"].T.astype(jnp.float32)) / scale              # (A, A)
    bffn = params["ffn_b"].reshape(1, Dm).astype(jnp.float32)

    tb, bp = _batch_tile(B, row_bytes=L * Dm * 4)
    if bp > B:
        padn = bp - B
        x = jnp.pad(x, ((0, padn), (0, 0), (0, 0)))
        pad3 = jnp.pad(pad3, ((0, padn), (0, 0), (0, 0)), constant_values=1.0)
        tgt = jnp.pad(tgt, ((0, padn), (0, 0)))

    kernel = functools.partial(_weighted_sum_kernel,
                               num_heads=num_heads, head_dim=head_dim)

    out, attn = pl.pallas_call(
        kernel,
        out_shape=(jax.ShapeDtypeStruct((bp, Dm), jnp.float32),
                   jax.ShapeDtypeStruct((bp, num_heads, L), jnp.float32)),
        grid=(bp // tb,),
        in_specs=[
            pl.BlockSpec((tb, L, Dm), lambda b: (b, 0, 0)),            # transformer_out
            pl.BlockSpec((tb, 1, L), lambda b: (b, 0, 0)),             # padding mask (lane-dense)
            pl.BlockSpec((tb, Di), lambda b: (b, 0)),                  # target item emb
            pl.BlockSpec((Di, A), lambda b: (0, 0)),                   # W_q
            pl.BlockSpec((Dm, A), lambda b: (0, 0)),                   # W_k
            pl.BlockSpec((Dm, A), lambda b: (0, 0)),                   # W_v
            pl.BlockSpec((A, A), lambda b: (0, 0)),                    # blockdiag(W_kernel^T)/scale
            pl.BlockSpec((A, Dm), lambda b: (0, 0)),                   # ffn W
            pl.BlockSpec((1, Dm), lambda b: (0, 0)),                   # ffn b
        ],
        out_specs=(pl.BlockSpec((tb, Dm), lambda b: (b, 0)),           # pooled output
                   pl.BlockSpec((tb, num_heads, L), lambda b: (b, 0, 0))),  # attn, lane-dense (B,H,L)
        compiler_params=pltpu.CompilerParams(
            dimension_semantics=("parallel",),
            vmem_limit_bytes=48 * 1024 * 1024),
    )(x, pad3, tgt,
      params["W_q"].astype(jnp.float32), params["W_k"].astype(jnp.float32),
      params["W_v"].astype(jnp.float32), wkb,
      params["ffn_W"].astype(jnp.float32), bffn)

    return out[:B], attn[:B]


# -----------------------------------------------------------------------------
# mean / sum pooling kernel  (batch-tiled, MXU reduction)
# -----------------------------------------------------------------------------
def _masked_reduce_kernel(x_ref, w_ref, out_ref, *, mean):
    tb, L, dm = x_ref.shape
    w = w_ref[...]                                                    # (TB, 1, L) valid weights
    s = jnp.einsum("bql,bld->bqd", w, x_ref[...],
                   preferred_element_type=jnp.float32).reshape(tb, dm)
    if mean:
        cnt = jnp.sum(w, axis=-1)                                     # (TB, 1)
        s = s / (cnt + 1e-12)                                         # exact div (matches torch)
    out_ref[...] = s


def masked_reduce_pooling(transformer_out, mask, *, mean):
    B, L, Dm = transformer_out.shape
    x = transformer_out.astype(jnp.float32)
    valid3 = (1.0 - mask.astype(jnp.float32)).reshape(B, 1, L)        # lane-dense valid mask

    tb, bp = _batch_tile(B, row_bytes=L * Dm * 4)
    if bp > B:
        padn = bp - B
        x = jnp.pad(x, ((0, padn), (0, 0), (0, 0)))
        valid3 = jnp.pad(valid3, ((0, padn), (0, 0), (0, 0)))

    out = pl.pallas_call(
        functools.partial(_masked_reduce_kernel, mean=mean),
        out_shape=jax.ShapeDtypeStruct((bp, Dm), jnp.float32),
        grid=(bp // tb,),
        in_specs=[pl.BlockSpec((tb, L, Dm), lambda b: (b, 0, 0)),
                  pl.BlockSpec((tb, 1, L), lambda b: (b, 0, 0))],
        out_specs=pl.BlockSpec((tb, Dm), lambda b: (b, 0)),
        compiler_params=pltpu.CompilerParams(
            dimension_semantics=("parallel",),
            vmem_limit_bytes=48 * 1024 * 1024),
    )(x, valid3)
    return out[:B]


# -----------------------------------------------------------------------------
# top-level dispatcher mirroring PoolingLayer.forward
# -----------------------------------------------------------------------------
def pooling_layer(seq_pooling_type, transformer_out, mask, target_item_emb=None,
                  params=None, num_heads=1, use_scale=True):
    if seq_pooling_type == "mean":
        return masked_reduce_pooling(transformer_out, mask, mean=True)
    elif seq_pooling_type == "sum":
        return (masked_reduce_pooling(transformer_out, mask, mean=False),)
    elif seq_pooling_type == "target":
        return transformer_out[:, -1, :]                              # pure indexing, plain JAX
    elif seq_pooling_type == "concat":
        return transformer_out.reshape(transformer_out.shape[0], -1)  # pure reshape
    elif seq_pooling_type == "weighted_sum":
        return weighted_sum_pooling(transformer_out, mask, target_item_emb, params,
                                    num_heads=num_heads, use_scale=use_scale)
    else:
        raise ValueError(f"seq_pooling_type={seq_pooling_type} not supported.")


# -----------------------------------------------------------------------------
# pure-JAX references (for correctness check)
# -----------------------------------------------------------------------------
def _ref_weighted_sum(x, mask, tgt, params, num_heads, use_scale):
    A = params["W_q"].shape[1]
    d = A // num_heads
    B, L, Dm = x.shape
    K = _prelu(x @ params["W_k"])
    V = _prelu(x @ params["W_v"])
    Q = _prelu(tgt @ params["W_q"])
    K = K.reshape(B, L, num_heads, d).transpose(0, 2, 1, 3)
    V = V.reshape(B, L, num_heads, d).transpose(0, 2, 1, 3)
    Q = Q.reshape(B, 1, num_heads, d).transpose(0, 2, 1, 3)
    s = jnp.einsum("bhld,de,bhqe->bhlq", K, params["W_kernel"], Q)[..., 0]
    if use_scale:
        s = s / math.sqrt(A)
    s = jnp.where(mask[:, None, :].astype(jnp.float32) >= 0.5, -1e9, s)
    attn = jax.nn.softmax(s, axis=-1)
    out_bhd = jnp.einsum("bhl,bhld->bhd", attn, V)
    out = jnp.swapaxes(out_bhd, 1, 2).reshape(B, A)   # torch: transpose(1,2).view(B, H*d)
    return _prelu(out @ params["ffn_W"] + params["ffn_b"]), attn


def _ref_mean(x, mask):
    w = (1.0 - mask.astype(jnp.float32))[..., None]
    return (x * w).sum(axis=1) / (w.sum(axis=1) + 1e-12)


def _ref_sum(x, mask):
    w = (1.0 - mask.astype(jnp.float32))[..., None]
    return (x * w).sum(axis=1)


if __name__ == "__main__":
    B, L, Dm, Di, A, H = 2, 8, 32, 16, 128, 1
    d = A // H

    key = jax.random.PRNGKey(0)
    kx, kt, k1, k2, k3, k4, k5, k6 = jax.random.split(key, 8)

    transformer_out = jax.random.normal(kx, (B, L, Dm), dtype=jnp.float32)
    target_item_emb = jax.random.normal(kt, (B, Di), dtype=jnp.float32)
    # mask: 1.0 = padding (torch forward flips it internally)
    mask = jnp.array([[0, 0, 0, 0, 0, 1, 1, 1],
                      [0, 0, 0, 1, 1, 1, 1, 1]], dtype=jnp.float32)

    params = {
        "W_q": 0.05 * jax.random.normal(k1, (Di, A), dtype=jnp.float32),
        "W_k": 0.05 * jax.random.normal(k2, (Dm, A), dtype=jnp.float32),
        "W_v": 0.05 * jax.random.normal(k3, (Dm, A), dtype=jnp.float32),
        # non-symmetric bilinear kernel so the transpose-fold is actually verified
        "W_kernel": jnp.eye(d, dtype=jnp.float32)
                    + 0.1 * jax.random.normal(k6, (d, d), dtype=jnp.float32),
        "ffn_W": 0.05 * jax.random.normal(k4, (A, Dm), dtype=jnp.float32),
        "ffn_b": 0.05 * jax.random.normal(k5, (Dm,), dtype=jnp.float32),
    }

    # weighted_sum / bilinear_attention path
    out, attn = pooling_layer("weighted_sum", transformer_out, mask,
                              target_item_emb, params, num_heads=H, use_scale=True)
    out, attn = jax.block_until_ready(out), jax.block_until_ready(attn)

    ref_out, ref_attn = _ref_weighted_sum(transformer_out, mask, target_item_emb,
                                          params, H, True)
    assert out.shape == (B, Dm) and attn.shape == (B, H, L)
    # tolerances account for the approx-reciprocal softmax denominator
    assert jnp.allclose(out, ref_out, atol=2e-3, rtol=2e-3), \
        float(jnp.max(jnp.abs(out - ref_out)))
    assert jnp.allclose(attn, ref_attn, atol=2e-3, rtol=2e-3), \
        float(jnp.max(jnp.abs(attn - ref_attn)))

    # mean pooling path
    mean_out = jax.block_until_ready(pooling_layer("mean", transformer_out, mask))
    assert jnp.allclose(mean_out, _ref_mean(transformer_out, mask), atol=1e-5, rtol=1e-5)

    # sum pooling path (torch returns a 1-tuple)
    (sum_out,) = pooling_layer("sum", transformer_out, mask)
    sum_out = jax.block_until_ready(sum_out)
    assert jnp.allclose(sum_out, _ref_sum(transformer_out, mask), atol=1e-5, rtol=1e-5)

    # target / concat paths (pure JAX glue)
    assert pooling_layer("target", transformer_out, mask).shape == (B, Dm)
    assert pooling_layer("concat", transformer_out, mask).shape == (B, L * Dm)

    print("KERNEL_OK")
</pallas_src>

<mosaic_0001>
module attributes {stable_mosaic.version = 11 : i64} {
  func.func @_weighted_sum_kernel(%arg0: i32, %arg1: memref<2x8x32xf32, #tpu.memory_space<vmem>>, %arg2: memref<2x1x8xf32, #tpu.memory_space<vmem>>, %arg3: memref<2x16xf32, #tpu.memory_space<vmem>>, %arg4: memref<16x128xf32, #tpu.memory_space<vmem>>, %arg5: memref<32x128xf32, #tpu.memory_space<vmem>>, %arg6: memref<32x128xf32, #tpu.memory_space<vmem>>, %arg7: memref<128x128xf32, #tpu.memory_space<vmem>>, %arg8: memref<128x32xf32, #tpu.memory_space<vmem>>, %arg9: memref<1x32xf32, #tpu.memory_space<vmem>>, %arg10: memref<2x32xf32, #tpu.memory_space<vmem>>, %arg11: memref<2x1x8xf32, #tpu.memory_space<vmem>>) attributes {dimension_semantics = [#tpu.dimension_semantics<parallel>], iteration_bounds = array<i64: 1>, scalar_prefetch = 0 : i64, scratch_operands = 0 : i64, tpu.core_type = #tpu.core_type<tc>, window_params = [{transform_indices = @transform_0, window_bounds = array<i64: 2, 8, 32>}, {transform_indices = @transform_1, window_bounds = array<i64: 2, 1, 8>}, {transform_indices = @transform_2, window_bounds = array<i64: 2, 16>}, {pipeline_mode = #tpu.pipeline_mode<synchronous>, transform_indices = @transform_3, window_bounds = array<i64: 16, 128>}, {pipeline_mode = #tpu.pipeline_mode<synchronous>, transform_indices = @transform_4, window_bounds = array<i64: 32, 128>}, {pipeline_mode = #tpu.pipeline_mode<synchronous>, transform_indices = @transform_5, window_bounds = array<i64: 32, 128>}, {pipeline_mode = #tpu.pipeline_mode<synchronous>, transform_indices = @transform_6, window_bounds = array<i64: 128, 128>}, {pipeline_mode = #tpu.pipeline_mode<synchronous>, transform_indices = @transform_7, window_bounds = array<i64: 128, 32>}, {pipeline_mode = #tpu.pipeline_mode<synchronous>, transform_indices = @transform_8, window_bounds = array<i64: 1, 32>}, {transform_indices = @transform_9, window_bounds = array<i64: 2, 32>}, {transform_indices = @transform_10, window_bounds = array<i64: 2, 1, 8>}]} {
    %c0 = arith.constant 0 : index
    %c0_0 = arith.constant 0 : index
    %c0_1 = arith.constant 0 : index
    %0 = vector.load %arg1[%c0, %c0_0, %c0_1] : memref<2x8x32xf32, #tpu.memory_space<vmem>>, vector<2x8x32xf32>
    %1 = vector.shape_cast %0 : vector<2x8x32xf32> to vector<16x32xf32>
    %c0_2 = arith.constant 0 : index
    %c0_3 = arith.constant 0 : index
    %2 = vector.load %arg5[%c0_2, %c0_3] : memref<32x128xf32, #tpu.memory_space<vmem>>, vector<32x128xf32>
    %cst = arith.constant dense<0.000000e+00> : vector<16x128xf32>
    %3 = tpu.matmul %1, %2, %cst {dimension_numbers = #tpu.dot_dimension_numbers<[1], [0], [0], [1], [0, 0, 1, 1], [], []>} : vector<16x32xf32>, vector<32x128xf32>, vector<16x128xf32> -> vector<16x128xf32>
    %cst_4 = arith.constant 0.000000e+00 : f32
    %4 = vector.broadcast %cst_4 : f32 to vector<16x128xf32>
    %5 = arith.cmpf oge, %3, %4 : vector<16x128xf32>
    %cst_5 = arith.constant 2.500000e-01 : f32
    %6 = vector.broadcast %cst_5 : f32 to vector<16x128xf32>
    %7 = arith.mulf %6, %3 : vector<16x128xf32>
    %8 = arith.select %5, %3, %7 : vector<16x128xi1>, vector<16x128xf32>
    %c0_6 = arith.constant 0 : index
    %c0_7 = arith.constant 0 : index
    %9 = vector.load %arg6[%c0_6, %c0_7] : memref<32x128xf32, #tpu.memory_space<vmem>>, vector<32x128xf32>
    %cst_8 = arith.constant dense<0.000000e+00> : vector<16x128xf32>
    %10 = tpu.matmul %1, %9, %cst_8 {dimension_numbers = #tpu.dot_dimension_numbers<[1], [0], [0], [1], [0, 0, 1, 1], [], []>} : vector<16x32xf32>, vector<32x128xf32>, vector<16x128xf32> -> vector<16x128xf32>
    %cst_9 = arith.constant 0.000000e+00 : f32
    %11 = vector.broadcast %cst_9 : f32 to vector<16x128xf32>
    %12 = arith.cmpf oge, %10, %11 : vector<16x128xf32>
    %cst_10 = arith.constant 2.500000e-01 : f32
    %13 = vector.broadcast %cst_10 : f32 to vector<16x128xf32>
    %14 = arith.mulf %13, %10 : vector<16x128xf32>
    %15 = arith.select %12, %10, %14 : vector<16x128xi1>, vector<16x128xf32>
    %c0_11 = arith.constant 0 : index
    %c0_12 = arith.constant 0 : index
    %16 = vector.load %arg3[%c0_11, %c0_12] : memref<2x16xf32, #tpu.memory_space<vmem>>, vector<2x16xf32>
    %c0_13 = arith.constant 0 : index
    %c0_14 = arith.constant 0 : index
    %17 = vector.load %arg4[%c0_13, %c0_14] : memref<16x128xf32, #tpu.memory_space<vmem>>, vector<16x128xf32>
    %cst_15 = arith.constant dense<0.000000e+00> : vector<2x128xf32>
    %18 = tpu.matmul %16, %17, %cst_15 {dimension_numbers = #tpu.dot_dimension_numbers<[1], [0], [0], [1], [0, 0, 1, 1], [], []>} : vector<2x16xf32>, vector<16x128xf32>, vector<2x128xf32> -> vector<2x128xf32>
    %cst_16 = arith.constant 0.000000e+00 : f32
    %19 = vector.broadcast %cst_16 : f32 to vector<2x128xf32>
    %20 = arith.cmpf oge, %18, %19 : vector<2x128xf32>
    %cst_17 = arith.constant 2.500000e-01 : f32
    %21 = vector.broadcast %cst_17 : f32 to vector<2x128xf32>
    %22 = arith.mulf %21, %18 : vector<2x128xf32>
    %23 = arith.select %20, %18, %22 : vector<2x128xi1>, vector<2x128xf32>
    %c0_18 = arith.constant 0 : index
    %c0_19 = arith.constant 0 : index
    %24 = vector.load %arg7[%c0_18, %c0_19] : memref<128x128xf32, #tpu.memory_space<vmem>>, vector<128x128xf32>
    %cst_20 = arith.constant dense<0.000000e+00> : vector<2x128xf32>
    %25 = tpu.matmul %23, %24, %cst_20 {dimension_numbers = #tpu.dot_dimension_numbers<[1], [0], [0], [1], [0, 0, 1, 1], [], []>} : vector<2x128xf32>, vector<128x128xf32>, vector<2x128xf32> -> vector<2x128xf32>
    %26 = vector.shape_cast %8 : vector<16x128xf32> to vector<2x8x128xf32>
    %27 = vector.shape_cast %15 : vector<16x128xf32> to vector<2x8x128xf32>
    %28 = vector.shape_cast %25 : vector<2x128xf32> to vector<2x1x128xf32>
    %29 = vector.broadcast %28 : vector<2x1x128xf32> to vector<2x8x128xf32>
    %30 = arith.mulf %26, %29 : vector<2x8x128xf32>
    %cst_21 = arith.constant dense<0.000000e+00> : vector<2x8xf32>
    %31 = vector.multi_reduction <add>, %30, %cst_21 [2] : vector<2x8x128xf32> to vector<2x8xf32>
    %32 = vector.shape_cast %31 : vector<2x8xf32> to vector<2x1x8xf32>
    %c0_22 = arith.constant 0 : index
    %c0_23 = arith.constant 0 : index
    %c0_24 = arith.constant 0 : index
    %33 = vector.load %arg2[%c0_22, %c0_23, %c0_24] : memref<2x1x8xf32, #tpu.memory_space<vmem>>, vector<2x1x8xf32>
    %cst_25 = arith.constant 5.000000e-01 : f32
    %34 = vector.broadcast %cst_25 : f32 to vector<2x1x8xf32>
    %35 = arith.cmpf oge, %33, %34 : vector<2x1x8xf32>
    %cst_26 = arith.constant -1.000000e+09 : f32
    %36 = vector.broadcast %cst_26 : f32 to vector<2x1x8xf32>
    %37 = arith.select %35, %36, %32 : vector<2x1x8xi1>, vector<2x1x8xf32>
    %cst_27 = arith.constant dense<0xFF800000> : vector<2x1xf32>
    %38 = vector.multi_reduction <maximumf>, %37, %cst_27 [2] : vector<2x1x8xf32> to vector<2x1xf32>
    %39 = vector.shape_cast %38 : vector<2x1xf32> to vector<2x1x1xf32>
    %40 = vector.broadcast %39 : vector<2x1x1xf32> to vector<2x1x8xf32>
    %41 = arith.subf %37, %40 : vector<2x1x8xf32>
    %42 = math.exp %41 : vector<2x1x8xf32>
    %cst_28 = arith.constant dense<0.000000e+00> : vector<2x1xf32>
    %43 = vector.multi_reduction <add>, %42, %cst_28 [2] : vector<2x1x8xf32> to vector<2x1xf32>
    %44 = vector.shape_cast %43 : vector<2x1xf32> to vector<2x1x1xf32>
    %45 = tpu.reciprocal %44 {approx = true} : vector<2x1x1xf32> -> vector<2x1x1xf32>
    %46 = vector.broadcast %45 : vector<2x1x1xf32> to vector<2x1x8xf32>
    %47 = arith.mulf %42, %46 : vector<2x1x8xf32>
    %c0_29 = arith.constant 0 : index
    %c0_30 = arith.constant 0 : index
    %c0_31 = arith.constant 0 : index
    %48 = vector.load %arg11[%c0_29, %c0_30, %c0_31] : memref<2x1x8xf32, #tpu.memory_space<vmem>>, vector<2x1x8xf32>
    tpu.vector_store %arg11[%c0_29, %c0_30, %c0_31], %47 {strides = array<i32>} : memref<2x1x8xf32, #tpu.memory_space<vmem>>, vector<2x1x8xf32>,
    "tpu.trace_start"() <{level = 10 : i32, message = "bql,bld->bqd"}> : () -> ()
    %cst_32 = arith.constant dense<0.000000e+00> : vector<2x1x128xf32>
    %49 = tpu.matmul %47, %27, %cst_32 {dimension_numbers = #tpu.dot_dimension_numbers<[2], [1], [1], [2], [0, 0, 0, 1, 1, 2], [0], [0]>} : vector<2x1x8xf32>, vector<2x8x128xf32>, vector<2x1x128xf32> -> vector<2x1x128xf32>
    "tpu.trace_stop"() : () -> ()
    %50 = vector.shape_cast %49 : vector<2x1x128xf32> to vector<2x128xf32>
    %c0_33 = arith.constant 0 : index
    %c0_34 = arith.constant 0 : index
    %51 = vector.load %arg8[%c0_33, %c0_34] : memref<128x32xf32, #tpu.memory_space<vmem>>, vector<128x32xf32>
    %cst_35 = arith.constant dense<0.000000e+00> : vector<2x32xf32>
    %52 = tpu.matmul %50, %51, %cst_35 {dimension_numbers = #tpu.dot_dimension_numbers<[1], [0], [0], [1], [0, 0, 1, 1], [], []>} : vector<2x128xf32>, vector<128x32xf32>, vector<2x32xf32> -> vector<2x32xf32>
    %c0_36 = arith.constant 0 : index
    %c0_37 = arith.constant 0 : index
    %53 = vector.load %arg9[%c0_36, %c0_37] : memref<1x32xf32, #tpu.memory_space<vmem>>, vector<1x32xf32>
    %54 = vector.broadcast %53 : vector<1x32xf32> to vector<2x32xf32>
    %55 = arith.addf %52, %54 : vector<2x32xf32>
    %cst_38 = arith.constant 0.000000e+00 : f32
    %56 = vector.broadcast %cst_38 : f32 to vector<2x32xf32>
    %57 = arith.cmpf oge, %55, %56 : vector<2x32xf32>
    %cst_39 = arith.constant 2.500000e-01 : f32
    %58 = vector.broadcast %cst_39 : f32 to vector<2x32xf32>
    %59 = arith.mulf %58, %55 : vector<2x32xf32>
    %60 = arith.select %57, %55, %59 : vector<2x32xi1>, vector<2x32xf32>
    %c0_40 = arith.constant 0 : index
    %c0_41 = arith.constant 0 : index
    %61 = vector.load %arg10[%c0_40, %c0_41] : memref<2x32xf32, #tpu.memory_space<vmem>>, vector<2x32xf32>
    tpu.vector_store %arg10[%c0_40, %c0_41], %60 {strides = array<i32>} : memref<2x32xf32, #tpu.memory_space<vmem>>, vector<2x32xf32>,
    return
  }
  func.func @transform_0(%arg0: i32) -> (i32, i32, i32) {
    %c0_i32 = arith.constant 0 : i32
    %c0_i32_0 = arith.constant 0 : i32
    %c0_i32_1 = arith.constant 0 : i32
    return %arg0, %c0_i32, %c0_i32_0 : i32, i32, i32
  }
  func.func @transform_1(%arg0: i32) -> (i32, i32, i32) {
    %c0_i32 = arith.constant 0 : i32
    %c0_i32_0 = arith.constant 0 : i32
    %c0_i32_1 = arith.constant 0 : i32
    return %arg0, %c0_i32, %c0_i32_0 : i32, i32, i32
  }
  func.func @transform_2(%arg0: i32) -> (i32, i32) {
    %c0_i32 = arith.constant 0 : i32
    %c0_i32_0 = arith.constant 0 : i32
    return %arg0, %c0_i32 : i32, i32
  }
  func.func @transform_3(%arg0: i32) -> (i32, i32) {
    %c0_i32 = arith.constant 0 : i32
    %c0_i32_0 = arith.constant 0 : i32
    %c0_i32_1 = arith.constant 0 : i32
    return %c0_i32, %c0_i32_0 : i32, i32
  }
  func.func @transform_4(%arg0: i32) -> (i32, i32) {
    %c0_i32 = arith.constant 0 : i32
    %c0_i32_0 = arith.constant 0 : i32
    %c0_i32_1 = arith.constant 0 : i32
    return %c0_i32, %c0_i32_0 : i32, i32
  }
  func.func @transform_5(%arg0: i32) -> (i32, i32) {
    %c0_i32 = arith.constant 0 : i32
    %c0_i32_0 = arith.constant 0 : i32
    %c0_i32_1 = arith.constant 0 : i32
    return %c0_i32, %c0_i32_0 : i32, i32
  }
  func.func @transform_6(%arg0: i32) -> (i32, i32) {
    %c0_i32 = arith.constant 0 : i32
    %c0_i32_0 = arith.constant 0 : i32
    %c0_i32_1 = arith.constant 0 : i32
    return %c0_i32, %c0_i32_0 : i32, i32
  }
  func.func @transform_7(%arg0: i32) -> (i32, i32) {
    %c0_i32 = arith.constant 0 : i32
    %c0_i32_0 = arith.constant 0 : i32
    %c0_i32_1 = arith.constant 0 : i32
    return %c0_i32, %c0_i32_0 : i32, i32
  }
  func.func @transform_8(%arg0: i32) -> (i32, i32) {
    %c0_i32 = arith.constant 0 : i32
    %c0_i32_0 = arith.constant 0 : i32
    %c0_i32_1 = arith.constant 0 : i32
    return %c0_i32, %c0_i32_0 : i32, i32
  }
  func.func @transform_9(%arg0: i32) -> (i32, i32) {
    %c0_i32 = arith.constant 0 : i32
    %c0_i32_0 = arith.constant 0 : i32
    return %arg0, %c0_i32 : i32, i32
  }
  func.func @transform_10(%arg0: i32) -> (i32, i32, i32) {
    %c0_i32 = arith.constant 0 : i32
    %c0_i32_0 = arith.constant 0 : i32
    %c0_i32_1 = arith.constant 0 : i32
    return %arg0, %c0_i32, %c0_i32_0 : i32, i32, i32
  }
}

</mosaic_0001>

<bundles_post_ra>
// kernel: tpu_custom_call.1
= control target key start
LH: loop header
LB: loop body
LE: loop exit
PB: predicated region body
PF: predicated region fallthrough
CT: control target
= control target key end

     0   :  { %16 = vsyncpa [#allocation3], 0  ;;  %s830_s0 = inlined_call_operand.hbm [shape: f32[2,8,32], index: 0, kind: input, shape index: {}]   ;;  %s831_s1 = inlined_call_operand.vmem [shape: f32[2,1,8], index: 1, kind: input, shape index: {}]   ;;  %s832_s2 = inlined_call_operand.vmem [shape: f32[2,16], index: 2, kind: input, shape index: {}]   ;;  %s833_s3 = inlined_call_operand.hbm [shape: f32[16,128], index: 3, kind: input, shape index: {}]   ;;  %s834_s4 = inlined_call_operand.vmem [shape: f32[32,128], index: 4, kind: input, shape index: {}]   ;;  %s835_s5 = inlined_call_operand.hbm [shape: f32[32,128], index: 5, kind: input, shape index: {}]   ;;  %s836_s6 = inlined_call_operand.vmem [shape: f32[128,128], index: 6, kind: input, shape index: {}]   ;;  %s837_s7 = inlined_call_operand.vmem [shape: f32[128,32], index: 7, kind: input, shape index: {}]   ;;  %s838_s8 = inlined_call_operand.vmem [shape: f32[1,32], index: 8, kind: input, shape index: {}]   ;;  %s839_s9 = inlined_call_operand.hbm [shape: f32[2,32], index: 9, kind: output, shape index: {0}]   ;;  %s840_s10 = inlined_call_operand.hbm [shape: f32[2,1,8], index: 10, kind: output, shape index: {1}]  }
   0x1   :  { %17 = vsyncpa [#allocation6], 0 }
   0x2   :  { %18 = vsyncpa [#allocation4], 0 }
   0x3   :  { %19 = vsyncpa [#allocation10], 0  ;;  %s41_s15 = sshll.u32 %s833_s3, 4  ;;  %s612_s16 = smov [#allocation5]   ;;  %s42_s15 = int_to_ptr.hbm [resolvable:$true] %s41_s15 }
   0x4   :  { %s43_s17 = sshll.u32 %s612_s16, 4  ;;  %s24_s20 = sshll.u32 %s830_s0, 4  ;;  %s44_s17 = int_to_ptr.vmem [resolvable:$true] %s43_s17  ;;  %s25_s20 = int_to_ptr.hbm [resolvable:$true] %s24_s20 }
   0x5   :  { %s613_s21 = smov 128   ;;  %s614_s22 = smov 8  }
   0x6   :  { %49 = dma.hbm_to_vmem [thread:$0]  %s42_s15, 256, %s44_s17, [#allocation6], %s613_s21, %s613_s21, %s614_s22  }
   0x7   :  { %s615_s23 = smov [#allocation2]   ;;  %s56_s27 = sshll.u32 %s835_s5, 4  ;;  %s57_s27 = int_to_ptr.hbm [resolvable:$true] %s56_s27 }
   0x8   :  { %s26_s24 = sshll.u32 %s615_s23, 4  ;;  %s616_s3 = smov [#allocation7]   ;;  %s27_s24 = int_to_ptr.vmem [resolvable:$true] %s26_s24 }
   0x9   :  { %32 = dma.hbm_to_vmem [thread:$0]  %s25_s20, 256, %s27_s24, [#allocation3], %s613_s21, %s613_s21, %s614_s22  }
   0xa   :  { %s58_s28 = sshll.u32 %s616_s3, 4  ;;  %s59_s28 = int_to_ptr.vmem [resolvable:$true] %s58_s28 }
   0xb   :  { %64 = dma.hbm_to_vmem [thread:$0]  %s57_s27, 512, %s59_s28, [#allocation6], %s613_s21, %s613_s21, %s614_s22  }
   0xc   :  { %604 = dma.done.wait [#allocation3], 256  }
   0xd   :  { %605 = vsyncadd [#allocation3], 4294967040 }
   0xe   :  { %606 = dma.done.wait [#allocation6], 768  }
   0xf   :  { %607 = vsyncadd [#allocation6], 4294966528  ;;  %v160_v0 = vld [vmem:[#allocation5 + $0x8] sm:$0xff]  ;;  %v159_v1 = vld [vmem:[#allocation5] sm:$0xff]  ;;  %vm161_vm0 = vcmask 130048   ;;  %vm89_vm1 = vcmask 261120  }
  0x10   :  { %179 = vmatpush.msra.mxu2 %v160_v0  ;;  %v158_v2 = vld [vmem:[%s832_s2] sm:$0x3]  ;;  %v203_v3 = vld [vmem:[%s836_s6 + $0x78] sm:$0xff]  ;;  %v202_v4 = vld [vmem:[%s836_s6 + $0x70] sm:$0xff]  ;;  %v617_v40 = vmov 0   ;;  %vm297_vm6 = vcmask 57344  }
  0x11   :  { %204 = vmatpush.msra.mxu3 %v203_v3  ;;  %v201_v5 = vld [vmem:[%s836_s6 + $0x68] sm:$0xff]  ;;  %v200_v6 = vld [vmem:[%s836_s6 + $0x60] sm:$0xff]  ;;  %v88_v7 = vld [vmem:[%s834_s4 + $0x18] sm:$0xff]  ;;  %473 = vset.pattern.permute.xlu1 %v617_v40  ;;  %vm322_vm10 = vcmask 64512   ;;  %vm392_vm11 = vcmask 1041409   ;;  %s618_s0 = smov [#allocation9]  }
  0x12   :  { %180 = vmatpush.msra.mxu2 %v159_v1  ;;  %v87_v8 = vld [vmem:[%s834_s4 + $0x10] sm:$0xff]  ;;  %108 = vmatpush.msra.mxu1 %v88_v7  ;;  %v199_v9 = vld [vmem:[%s836_s6 + $0x58] sm:$0xff]  ;;  %v86_v10 = vld [vmem:[%s834_s4 + $0x8] sm:$0xff]  ;;  %v289_v1 = vlaneseq  ;;  %s435_s29 = sshll.u32 %s618_s0, 4  ;;  %s437_s11 = sshll.u32 %s840_s10, 4  ;;  %vm418_vm13 = vcmask 254976   ;;  %s436_s29 = int_to_ptr.vmem [resolvable:$true] %s435_s29  ;;  %s438_s11 = int_to_ptr.hbm [resolvable:$true] %s437_s11 }
  0x13   :  { %460 = vmatmul.msk.f32.vlgmr.msra.gmra.mxu2 %vm161_vm0, %v158_v2  ;;  %205 = vmatpush.msra.mxu3 %v202_v4  ;;  %v198_v11 = vld [vmem:[%s836_s6 + $0x50] sm:$0xff]  ;;  %v197_v12 = vld [vmem:[%s836_s6 + $0x48] sm:$0xff]  ;;  %v196_v13 = vld [vmem:[%s836_s6 + $0x40] sm:$0xff]  ;;  %s619_s12 = smov 16   ;;  %s620_s13 = smov 1  }
  0x14   :  { %109 = vmatpush.msra.mxu1 %v87_v8  ;;  %v195_v14 = vld [vmem:[%s836_s6 + $0x38] sm:$0xff]  ;;  %v194_v15 = vld [vmem:[%s836_s6 + $0x30] sm:$0xff]  ;;  %v193_v16 = vld [vmem:[%s836_s6 + $0x28] sm:$0xff]  ;;  %474 = vset.pattern.permute.xlu0 %v617_v40  ;;  %v290_v2 = vand.u32 127, %v289_v1  ;;  %s621_s15 = smov [#allocation8]   ;;  %s427_s18 = sshll.u32 %s839_s9, 4  ;;  %s428_s18 = int_to_ptr.hbm [resolvable:$true] %s427_s18 }
  0x15   :  { %206 = vmatpush.msra.mxu3 %v201_v5  ;;  %v192_v17 = vld [vmem:[%s836_s6 + $0x20] sm:$0xff]  ;;  %v191_v18 = vld [vmem:[%s836_s6 + $0x18] sm:$0xff]  ;;  %v190_v19 = vld [vmem:[%s836_s6 + $0x10] sm:$0xff]  ;;  %s425_s16 = sshll.u32 %s621_s15, 4  ;;  %s426_s16 = int_to_ptr.vmem [resolvable:$true] %s425_s16 }
  0x16   :  { %110 = vmatpush.msra.mxu1 %v86_v10  ;;  %v189_v20 = vld [vmem:[%s836_s6 + $0x8] sm:$0xff]  ;;  %v85_v21 = vld [vmem:[%s834_s4] sm:$0xff]  ;;  %v753_v24 = vld [vmem:[#allocation2 + $0x8] sm:$0xff] }
  0x17   :  { %207 = vmatpush.msra.mxu3 %v200_v6  ;;  %v746_v22 = vld [vmem:[#allocation2] sm:$0xff]  ;;  %v188_v23 = vld [vmem:[%s836_s6] sm:$0xff]  ;;  %v127_v62 = vld [vmem:[#allocation7 + $0x10] sm:$0xff] }
  0x18   :  { %111 = vmatpush.msra.mxu1 %v85_v21  ;;  %v128_v61 = vld [vmem:[#allocation7 + $0x18] sm:$0xff]  ;;  %v126_v63 = vld [vmem:[#allocation7 + $0x8] sm:$0xff]  ;;  %v125_v0 = vld [vmem:[#allocation7] sm:$0xff] }
  0x19   :  { %208 = vmatpush.msra.mxu3 %v199_v9  ;;  %456 = vmatmul.msk.f32.vlgmr.msra.gmra.mxu1 %vm89_vm1, %v746_v22  ;;  %v236_v3 = vld [vmem:[%s831_s1] sm:$0x1]  ;;  %v237_v8 = vld [vmem:[%s831_s1 + $0x1] sm:$0x1] }
  0x1a   :  { %141 = vmatpush.msrb.mxu1 %v128_v61  ;;  %vm238_vm5 = vcmp.ge.f32.partialorder %v236_v3, 0.5  ;;  %vm239_vm7 = vcmp.ge.f32.partialorder %v237_v8, 0.5 }
  0x1b   :  { %209 = vmatpush.msra.mxu3 %v198_v11 }
  0x1c   :  { %142 = vmatpush.msrb.mxu1 %v127_v62 }
  0x1d   :  { %210 = vmatpush.msra.mxu3 %v197_v12 }
  0x1e   :  { %143 = vmatpush.msrb.mxu1 %v126_v63 }
  0x1f   :  { %211 = vmatpush.msra.mxu3 %v196_v13 }
  0x20   :  { %144 = vmatpush.msrb.mxu1 %v125_v0 }
  0x21   :  { %212 = vmatpush.msra.mxu3 %v195_v14  ;;  %457 = vmatmul.msk.f32.gmra.mxu1 %vm89_vm1, %v753_v24 }
  0x23   :  { %213 = vmatpush.msra.mxu3 %v194_v15 }
  0x25   :  { %214 = vmatpush.msra.mxu3 %v193_v16 }
  0x27   :  { %215 = vmatpush.msra.mxu3 %v192_v17 }
  0x29   :  { %216 = vmatpush.msra.mxu3 %v191_v18  ;;  %458 = vmatmul.msk.f32.vlgmr.msrb.gmra.mxu1 %vm89_vm1, %v746_v22 }
  0x2b   :  { %217 = vmatpush.msra.mxu3 %v190_v19 }
  0x2d   :  { %218 = vmatpush.msra.mxu3 %v189_v20 }
  0x2f   :  { %219 = vmatpush.msra.mxu3 %v188_v23 }
  0x31   :  { %459 = vmatmul.msk.f32.gmra.mxu1 %vm89_vm1, %v753_v24 }
  0x96   :  { %v182_v25 = vpop.f32.mrf.mxu2  ;;  %v113_v28 = vpop.f32.mrf.mxu1 }
  0x97   :  { %v186_v26 = vmul.f32 0.25, %v182_v25  ;;  %vm185_vm2 = vcmp.ge.f32.partialorder %v182_v25, 0.0  ;;  %v121_v29 = vmul.f32 0.25, %v113_v28  ;;  %vm119_vm3 = vcmp.ge.f32.partialorder %v113_v28, 0.0 }
  0x99   :  { %v187_v27 = vsel %vm185_vm2, %v182_v25, %v186_v26  ;;  %v123_v33 = vsel %vm119_vm3, %v113_v28, %v121_v29  ;;  %v384_v29 = vld [vmem:[%s837_s7 + $0x78] sm:$0xff] }
  0x9a   :  { %220 = vmatmul.f32.vlgmr.msra.gmra.mxu3 %v187_v27  ;;  %395 = vmatpush.msra.mxu0 %v384_v29 }
  0x9e   :  { %v116_v32 = vpop.f32.mrf.mxu1 }
  0x9f   :  { %v122_v36 = vmul.f32 0.25, %v116_v32  ;;  %vm120_vm4 = vcmp.ge.f32.partialorder %v116_v32, 0.0 }
  0xa1   :  { %v124_v38 = vsel %vm120_vm4, %v116_v32, %v122_v36  ;;  %v381_v32 = vld [vmem:[%s837_s7 + $0x60] sm:$0xff]  ;;  %v378_v36 = vld [vmem:[%s837_s7 + $0x48] sm:$0xff] }
  0xa6   :  { %v146_v15 = vpop.f32.mrf.mxu1 }
  0xa7   :  { %v154_v16 = vmul.f32 0.25, %v146_v15  ;;  %vm152_vm8 = vcmp.ge.f32.partialorder %v146_v15, 0.0 }
  0xa9   :  { %v156_v18 = vsel %vm152_vm8, %v146_v15, %v154_v16 }
  0xaa   :  { %341 = vmatpush.msrb.mxu2 %v156_v18 }
  0xae   :  { %v149_v26 = vpop.f32.mrf.mxu1 }
  0xaf   :  { %vm153_vm9 = vcmp.ge.f32.partialorder %v149_v26, 0.0  ;;  %v155_v27 = vmul.f32 0.25, %v149_v26 }
  0xb1   :  { %v157_v28 = vsel %vm153_vm9, %v149_v26, %v155_v27 }
  0xb2   :  { %364 = vmatpush.msra.mxu2 %v157_v28 }
 0x11d   :  { %v221_v30 = vpop.f32.mrf.mxu3 }
 0x11e   :  { %v226_v31 = vperm.slane %v221_v30, 0  ;;  %v225_v34 = vrot.slane %v221_v30, 1  ;;  %v383_v30 = vld [vmem:[%s837_s7 + $0x70] sm:$0xff] }
 0x11f   :  { %396 = vmatpush.msra.mxu0 %v383_v30 }
 0x120   :  { %v230_v35 = vmul.f32 %v226_v31, %v123_v33  ;;  %v227_v37 = vperm.slane %v225_v34, 0  ;;  %v382_v31 = vld [vmem:[%s837_s7 + $0x68] sm:$0xff]  ;;  %v380_v33 = vld [vmem:[%s837_s7 + $0x58] sm:$0xff] }
 0x121   :  { %397 = vmatpush.msra.mxu0 %v382_v31 }
 0x122   :  { %232 = vadd.xlane.f32.xlu0 %v230_v35  ;;  %v231_v39 = vmul.f32 %v227_v37, %v124_v38  ;;  %v379_v35 = vld [vmem:[%s837_s7 + $0x50] sm:$0xff]  ;;  %v377_v37 = vld [vmem:[%s837_s7 + $0x40] sm:$0xff] }
 0x123   :  { %398 = vmatpush.msra.mxu0 %v381_v32 }
 0x125   :  { %399 = vmatpush.msra.mxu0 %v380_v33 }
 0x127   :  { %400 = vmatpush.msra.mxu0 %v379_v35 }
 0x129   :  { %401 = vmatpush.msra.mxu0 %v378_v36 }
 0x12a   :  { %234 = vadd.xlane.f32.xlu0 %v231_v39  ;;  %v376_v39 = vld [vmem:[%s837_s7 + $0x38] sm:$0xff] }
 0x12b   :  { %402 = vmatpush.msra.mxu0 %v377_v37 }
 0x12d   :  { %403 = vmatpush.msra.mxu0 %v376_v39 }
 0x195   :  { %v233_v41 = vpop.xlane.xlu0 %232 }
 0x196   :  { %v242_v42 = vperm.slane %v233_v41, 0  ;;  %v243_v43 = vperm.slane %v233_v41, 1  ;;  %v244_v44 = vperm.slane %v233_v41, 2  ;;  %v245_v45 = vperm.slane %v233_v41, 3 }
 0x197   :  { %v246_v46 = vperm.slane %v233_v41, 4  ;;  %v247_v47 = vperm.slane %v233_v41, 5  ;;  %v248_v48 = vperm.slane %v233_v41, 6  ;;  %v249_v49 = vperm.slane %v233_v41, 7  ;;  %v375_v41 = vld [vmem:[%s837_s7 + $0x30] sm:$0xff] }
 0x198   :  { %258 = vst [vmem:[#allocation1] ss:$9 sm:$0xff] %v242_v42  ;;  %404 = vmatpush.msra.mxu0 %v375_v41 }
 0x199   :  { %260 = vst [vmem:[#allocation1 + $0x1] ss:$9 sm:$0xff] %v243_v43 }
 0x19a   :  { %262 = vst [vmem:[#allocation1 + $0x2] ss:$9 sm:$0xff] %v244_v44 }
 0x19b   :  { %264 = vst [vmem:[#allocation1 + $0x3] ss:$9 sm:$0xff] %v245_v45  ;;  %v374_v45 = vld [vmem:[%s837_s7 + $0x28] sm:$0xff] }
 0x19c   :  { %266 = vst [vmem:[#allocation1 + $0x4] ss:$9 sm:$0xff] %v246_v46  ;;  %v373_v46 = vld [vmem:[%s837_s7 + $0x20] sm:$0xff]  ;;  %405 = vmatpush.msra.mxu0 %v374_v45 }
 0x19d   :  { %268 = vst [vmem:[#allocation1 + $0x5] ss:$9 sm:$0xff] %v247_v47  ;;  %v235_v50 = vpop.xlane.xlu0 %234  ;;  %v372_v47 = vld [vmem:[%s837_s7 + $0x18] sm:$0xff] }
 0x19e   :  { %270 = vst [vmem:[#allocation1 + $0x6] ss:$9 sm:$0xff] %v248_v48  ;;  %v250_v51 = vperm.slane %v235_v50, 0  ;;  %v251_v52 = vperm.slane %v235_v50, 1  ;;  %v252_v53 = vperm.slane %v235_v50, 2  ;;  %v253_v54 = vperm.slane %v235_v50, 3  ;;  %406 = vmatpush.msra.mxu0 %v373_v46 }
 0x19f   :  { %272 = vst [vmem:[#allocation1 + $0x7] ss:$9 sm:$0xff] %v249_v49  ;;  %v254_v56 = vperm.slane %v235_v50, 4  ;;  %v255_v57 = vperm.slane %v235_v50, 5  ;;  %v256_v58 = vperm.slane %v235_v50, 6  ;;  %v257_v59 = vperm.slane %v235_v50, 7 }
 0x1a0   :  { %v371_v48 = vld [vmem:[%s837_s7 + $0x10] sm:$0xff]  ;;  %407 = vmatpush.msra.mxu0 %v372_v47  ;;  %v370_v49 = vld [vmem:[%s837_s7 + $0x8] sm:$0xff]  ;;  %v369_v50 = vld [vmem:[%s837_s7] sm:$0xff] }
 0x1a2   :  { %408 = vmatpush.msra.mxu0 %v371_v48 }
 0x1a4   :  { %409 = vmatpush.msra.mxu0 %v370_v49 }
 0x1a6   :  { %v273_v55 = vld [vmem:[#allocation1] sm:$0xff]  ;;  %410 = vmatpush.msra.mxu0 %v369_v50 }
 0x1a7   :  { %284 = vperm.xlu1 %473, %v273_v55   ;;  %274 = vst [vmem:[#allocation1] ss:$9 sm:$0xff] %v250_v51  ;;  %v475_v55 = vld [vmem:[%s838_s8] ss:$0 sm:$0xff] }
 0x1a8   :  { %275 = vst [vmem:[#allocation1 + $0x1] ss:$9 sm:$0xff] %v251_v52 }
 0x1a9   :  { %276 = vst [vmem:[#allocation1 + $0x2] ss:$9 sm:$0xff] %v252_v53 }
 0x1aa   :  { %277 = vst [vmem:[#allocation1 + $0x3] ss:$9 sm:$0xff] %v253_v54 }
 0x1ab   :  { %278 = vst [vmem:[#allocation1 + $0x4] ss:$9 sm:$0xff] %v254_v56 }
 0x1ac   :  { %279 = vst [vmem:[#allocation1 + $0x5] ss:$9 sm:$0xff] %v255_v57 }
 0x1ad   :  { %280 = vst [vmem:[#allocation1 + $0x6] ss:$9 sm:$0xff] %v256_v58 }
 0x1ae   :  { %281 = vst [vmem:[#allocation1 + $0x7] ss:$9 sm:$0xff] %v257_v59 }
 0x1b5   :  { %v282_v60 = vld [vmem:[#allocation1] sm:$0xff] }
 0x1b6   :  { %287 = vperm.xlu1 %473, %v282_v60  }
 0x219   :  { %v285_v4 = vpop.permute.xlu1 %284 }
 0x21a   :  { %v291_v5 = vperm.slane %v285_v4, %v290_v2 }
 0x21c   :  { %v295_v6 = vsel %vm238_vm5, -1e+09, %v291_v5 }
 0x21d   :  { %v298_v7 = vsel %vm297_vm6, %v295_v6, -inf }
 0x21e   :  { %299 = vmax.xlane.f32.xlu2 %v298_v7 }
 0x228   :  { %v288_v9 = vpop.permute.xlu1 %287 }
 0x229   :  { %v292_v10 = vperm.slane %v288_v9, %v290_v2 }
 0x22b   :  { %v296_v11 = vsel %vm239_vm7, -1e+09, %v292_v10 }
 0x22c   :  { %v301_v12 = vsel %vm297_vm6, %v296_v11, -inf }
 0x22d   :  { %302 = vmax.xlane.f32.xlu2 %v301_v12 }
 0x291   :  { %v300_v13 = vpop.xlane.xlu2 %299 }
 0x292   :  { %v304_v14 = vsub.f32 %v295_v6, %v300_v13 }
 0x294   :  { %v306_v17 = vmul.f32 1.442695, %v304_v14 }
 0x296   :  { %476 = vpow2.f32 %v306_v17 }
 0x29c   :  { %v477_v19 = vpop.eup %476 }
 0x29d   :  { %v310_v20 = vsel %vm297_vm6, %v477_v19, 0.0 }
 0x29e   :  { %311 = vadd.xlane.f32.xlu0 %v310_v20 }
 0x2a0   :  { %v303_v21 = vpop.xlane.xlu2 %302 }
 0x2a1   :  { %v305_v22 = vsub.f32 %v296_v11, %v303_v21 }
 0x2a3   :  { %v308_v23 = vmul.f32 1.442695, %v305_v22 }
 0x2a5   :  { %478 = vpow2.f32 %v308_v23 }
 0x2ab   :  { %v479_v24 = vpop.eup %478 }
 0x2ac   :  { %v313_v25 = vsel %vm297_vm6, %v479_v24, 0.0 }
 0x2ad   :  { %314 = vadd.xlane.f32.xlu1 %v313_v25 }
 0x311   :  { %v312_v34 = vpop.xlane.xlu0 %311 }
 0x312   :  { %480 = vrcp.f32 %v312_v34 }
 0x318   :  { %v481_v38 = vpop.eup %480 }
 0x319   :  { %v318_v40 = vmul.f32 %v481_v38, %v477_v19 }
 0x31b   :  { %320 = vst.msk [vmem:[#allocation9] sm:$0x1] %vm297_vm6, %v318_v40  ;;  %461 = vmatmul.msk.f32.vlgmr.msrb.gmra.mxu2 %vm322_vm10, %v318_v40 }
 0x320   :  { %v315_v42 = vpop.xlane.xlu1 %314 }
 0x321   :  { %482 = vrcp.f32 %v315_v42 }
 0x327   :  { %v483_v43 = vpop.eup %482 }
 0x328   :  { %v319_v44 = vmul.f32 %v483_v43, %v479_v24 }
 0x32a   :  { %321 = vst.msk [vmem:[#allocation9 + $0x1] sm:$0x1] %vm297_vm6, %v319_v44  ;;  %462 = vmatmul.msk.f32.vlgmr.msra.gmra.mxu2 %vm322_vm10, %v319_v44 }
 0x32b   :  { %443 = dma.vmem_to_hbm [thread:$0]  %s436_s29, 32, %s438_s11, [#allocation10], %s619_s12, %s619_s12, %s620_s13  }
 0x39e   :  { %v343_v51 = vpop.f32.mrf.mxu2 }
 0x3ad   :  { %v366_v52 = vpop.f32.mrf.mxu2 }
 0x3ae   :  { %v391_v53 = vrot.slane %v366_v52, 7 }
 0x3b0   :  { %v393_v54 = vsel %vm392_vm11, %v391_v53, %v343_v51 }
 0x3b1   :  { %411 = vmatmul.f32.vlgmr.msra.gmra.mxu0 %v393_v54 }
 0x42e   :  { %v412_v56 = vpop.f32.mrf.mxu0 }
 0x42f   :  { %v413_v57 = vadd.f32 %v475_v55, %v412_v56 }
 0x431   :  { %vm415_vm12 = vcmp.ge.f32.partialorder %v413_v57, 0.0  ;;  %v416_v58 = vmul.f32 0.25, %v413_v57 }
 0x433   :  { %v417_v59 = vsel %vm415_vm12, %v413_v57, %v416_v58 }
 0x434   :  { %419 = vst.msk [vmem:[#allocation8] sm:$0x3] %vm418_vm13, %v417_v59 }
 0x435   :  { %430 = dma.vmem_to_hbm [thread:$0]  %s426_s16, 32, %s428_s18, [#allocation4]  }
 0x436   :  { %608 = dma.done.wait [#allocation4], 32  }
 0x437   :  { %609 = vsyncadd [#allocation4], 4294967264 }
 0x438   :  { %610 = dma.done.wait [#allocation10], 32  }
 0x439   :  { %611 = vsyncadd [#allocation10], 4294967264 }
 0x43a   :  { %452 = vsyncpa [#allocation3], 1 }
 0x43b   :  { %453 = vsyncpa [#allocation6], 1 }
 0x43c   :  { %454 = vsyncpa [#allocation4], 1 }
 0x43d   :  { %455 = vsyncpa [#allocation10], 1 }

</bundles_post_ra>
